<compile_context>
chip_gen: v7x
topology: tpu7x:2x2x1
jax: 0.10.0
libtpu: 0.0.40
codegen_flags: <defaults>
</compile_context>

<pallas_src>
import functools

import numpy as np

import jax
import jax.numpy as jnp
from jax import lax
from jax.experimental import pallas as pl
from jax.experimental.pallas import tpu as pltpu

_NEG_BIG = -1.0e30  # finite "-inf" so online-max corrections never produce NaN


def _round_up(x, m):
    return ((x + m - 1) // m) * m


# ----------------------------------------------------------------------------
# Pallas kernel: transposed pairwise-KL accumulator over feature tiles.
#   outputs:
#     pt[j, i]  = row_ent[j] - (1/l_t[j]) * sum_d fs[i,d] * exp(ft[j,d]-m_t[j])
#     lse_s[i]  = logsumexp_d fs[i, d]
#   so that kl[i, j] = KL(teacher_j || student_i) = pt[j, i] + lse_s[i].
# ----------------------------------------------------------------------------
def _kl_matrix_kernel(fs_ref, ft_ref, pt_ref, lse_ref,
                      m_s, l_s, m_t, l_t, e_t, acc):
    k = pl.program_id(1)

    @pl.when(k == 0)
    def _init():
        m_s[...] = jnp.full_like(m_s, _NEG_BIG)
        l_s[...] = jnp.zeros_like(l_s)
        m_t[...] = jnp.full_like(m_t, _NEG_BIG)
        l_t[...] = jnp.zeros_like(l_t)
        e_t[...] = jnp.zeros_like(e_t)
        acc[...] = jnp.zeros_like(acc)

    fs = fs_ref[...].astype(jnp.float32)   # (tb, tk)   student logits tile
    ft = ft_ref[...].astype(jnp.float32)   # (Bp, tk)   teacher logits tile

    # ---- student: online logsumexp over the feature axis ----
    m_s_old = m_s[...]
    m_s_new = jnp.maximum(m_s_old, jnp.max(fs, axis=-1, keepdims=True))
    l_s[...] = (l_s[...] * jnp.exp(m_s_old - m_s_new)
                + jnp.sum(jnp.exp(fs - m_s_new), axis=-1, keepdims=True))
    m_s[...] = m_s_new

    # ---- teacher: online softmax statistics ----
    m_t_old = m_t[...]
    m_t_new = jnp.maximum(m_t_old, jnp.max(ft, axis=-1, keepdims=True))
    alpha = jnp.exp(m_t_old - m_t_new)                       # (Bp, 1)
    p_un = jnp.exp(ft - m_t_new)                             # (Bp, tk) unnormalized probs
    l_t_old = l_t[...]
    e_t[...] = (alpha * (e_t[...] + (m_t_old - m_t_new) * l_t_old)
                + jnp.sum(p_un * (ft - m_t_new), axis=-1, keepdims=True))
    l_t[...] = alpha * l_t_old + jnp.sum(p_un, axis=-1, keepdims=True)
    m_t[...] = m_t_new

    # ---- cross accumulator (transposed): acc[j, i] += p_un[j, :] . fs[i, :] ----
    acc[...] = (acc[...] * alpha
                + lax.dot_general(p_un, fs, (((1,), (1,)), ((), ())),
                                  preferred_element_type=jnp.float32))

    @pl.when(k == pl.num_programs(1) - 1)
    def _finalize():
        inv_lt = pl.reciprocal(l_t[...], approx=True)        # (Bp, 1)  EUP
        row_ent = e_t[...] * inv_lt - jnp.log(l_t[...])      # sum_d t*log t
        pt_ref[...] = row_ent - acc[...] * inv_lt            # (Bp, tb)
        lse_ref[...] = m_s[...] + jnp.log(l_s[...])          # (tb, 1)


def pairwise_kl_matrix(fs2d, ft2d, *, tk_target=512, tb_max=128):
    """kl[i, j] = sum_d softmax(ft_j)[d] * (log_softmax(ft_j)[d] - log_softmax(fs_i)[d])."""
    B, D = fs2d.shape

    # Feature-axis tile / padding (lane dim must be a multiple of 128 or full).
    if D > tk_target:
        tk = tk_target
        d_pad = _round_up(D, tk)
    else:
        d_pad = _round_up(D, 128)
        tk = d_pad

    # Student-row block / batch padding (sublane dim multiple of 8).
    tb = min(_round_up(B, 8), tb_max)
    b_pad = _round_up(B, tb)

    def _pad(x):
        x = jnp.pad(x, ((0, 0), (0, d_pad - D)), constant_values=_NEG_BIG)
        return jnp.pad(x, ((0, b_pad - B), (0, 0)))          # zero rows: finite, sliced off

    fs_p, ft_p = _pad(fs2d), _pad(ft2d)
    nb, nk = b_pad // tb, d_pad // tk

    ptrans, lse_s = pl.pallas_call(
        _kl_matrix_kernel,
        out_shape=(jax.ShapeDtypeStruct((b_pad, b_pad), jnp.float32),
                   jax.ShapeDtypeStruct((b_pad, 1), jnp.float32)),
        grid_spec=pltpu.PrefetchScalarGridSpec(
            num_scalar_prefetch=0,
            grid=(nb, nk),                                    # (student blocks, feature tiles)
            in_specs=[pl.BlockSpec((tb, tk), lambda i, k: (i, k)),       # student tile
                      pl.BlockSpec((b_pad, tk), lambda i, k: (0, k))],   # all teacher rows
            out_specs=[pl.BlockSpec((b_pad, tb), lambda i, k: (0, i)),   # pt (transposed kl)
                       pl.BlockSpec((tb, 1), lambda i, k: (i, 0))],      # student logsumexp
            scratch_shapes=[pltpu.VMEM((tb, 1), jnp.float32),       # m_s
                            pltpu.VMEM((tb, 1), jnp.float32),       # l_s
                            pltpu.VMEM((b_pad, 1), jnp.float32),    # m_t
                            pltpu.VMEM((b_pad, 1), jnp.float32),    # l_t
                            pltpu.VMEM((b_pad, 1), jnp.float32),    # e_t
                            pltpu.VMEM((b_pad, tb), jnp.float32)]), # acc (transposed)
        compiler_params=pltpu.CompilerParams(
            dimension_semantics=("parallel", "arbitrary")),
    )(fs_p, ft_p)

    kl = ptrans.T + lse_s          # kl[i, j] = ptrans[j, i] + lse_s[i]  (tiny, plain XLA)
    return kl[:B, :B]


# ----------------------------------------------------------------------------
# Vectorized pairing weights (replaces the class x group Python loop).
# W[i, j] = 1 / |{same (class, group) as i}|   iff  labels[i] == labels[j] and
#           rank of i within its (class, group) subset == rank of j within its
#           class subset (this is exactly the boolean-mask pairing + truncation
#           + kl_div(reduction='batchmean') semantics of the PyTorch module).
# ----------------------------------------------------------------------------
def _pairing_weights(labels, groups, num_classes, num_groups):
    B = labels.shape[0]
    labels = labels.astype(jnp.int32)
    groups = groups.astype(jnp.int32)

    same_cls = labels[:, None] == labels[None, :]                     # (B, B)
    same_cg = same_cls & (groups[:, None] == groups[None, :])         # (B, B)

    idx = jnp.arange(B, dtype=jnp.int32)
    le = idx[:, None] <= idx[None, :]                                 # le[p, q]: p <= q
    t_rank = jnp.sum((le & same_cls).astype(jnp.int32), axis=0) - 1   # rank within class
    s_rank = jnp.sum((le & same_cg).astype(jnp.int32), axis=0) - 1    # rank within (class, group)
    n_cg = jnp.sum(same_cg.astype(jnp.int32), axis=0)                 # subset size ('batchmean')

    valid_t = (labels >= 0) & (labels < num_classes)
    valid_s = valid_t & (groups >= 0) & (groups < num_groups)

    pair = same_cls & (s_rank[:, None] == t_rank[None, :])
    pair = pair & valid_s[:, None] & valid_t[None, :]
    return pair.astype(jnp.float32) / jnp.maximum(n_cg, 1)[:, None].astype(jnp.float32)


class KLLossPallas:
    """Pallas/JAX re-implementation of trainer/kd_mfd.py:KLLoss.forward."""

    def __init__(self, w_m, num_groups, num_classes):
        self.w_m = float(w_m)
        self.num_groups = int(num_groups)
        self.num_classes = int(num_classes)

    @functools.partial(jax.jit, static_argnums=(0, 5))
    def __call__(self, f_s, f_t, groups, labels, jointfeature=False):
        B = f_s.shape[0]
        fs2d = f_s.reshape(B, -1)
        ft2d = f_t.reshape(B, -1)
        if fs2d.shape != ft2d.shape:
            raise ValueError("Student and Teacher features must have the same shape")
        kl_mat = pairwise_kl_matrix(fs2d, ft2d)                       # (B, B)
        if jointfeature:
            kl = jnp.trace(kl_mat) / B
        else:
            W = _pairing_weights(labels, groups, self.num_classes, self.num_groups)
            kl = jnp.sum(W * kl_mat)
        return self.w_m * kl


# ----------------------------------------------------------------------------
# NumPy port of the PyTorch reference (for an in-script sanity check).
# ----------------------------------------------------------------------------
def _reference_loss(f_s, f_t, groups, labels, w_m, num_groups, num_classes,
                    jointfeature=False):
    fs = np.asarray(f_s, np.float64).reshape(f_s.shape[0], -1)
    ft = np.asarray(f_t, np.float64).reshape(f_t.shape[0], -1)
    labels = np.asarray(labels)
    groups = np.asarray(groups)

    def log_softmax(x):
        x = x - x.max(axis=1, keepdims=True)
        return x - np.log(np.exp(x).sum(axis=1, keepdims=True))

    student = log_softmax(fs)
    t_log = log_softmax(ft)
    teacher = np.exp(t_log)

    if jointfeature:
        kl = (teacher * (t_log - student)).sum() / fs.shape[0]
    else:
        kl = 0.0
        for c in range(num_classes):
            tmask = labels == c
            tf, tl = teacher[tmask], t_log[tmask]
            if tf.shape[0] == 0:
                continue
            for g in range(num_groups):
                smask = (labels == c) & (groups == g)
                sf = student[smask]
                if sf.shape[0] == 0:
                    continue
                n = min(sf.shape[0], tf.shape[0])
                kl += (tf[:n] * (tl[:n] - sf[:n])).sum() / n
    return w_m * kl


# ----------------------------------------------------------------------------
if __name__ == "__main__":
    key = jax.random.PRNGKey(0)
    k1, k2, k3, k4 = jax.random.split(key, 4)

    # small shapes consistent with the module's forward (NCHW feature maps)
    B, C, H, Wd = 8, 4, 16, 16
    num_classes, num_groups, w_m = 3, 2, 2.0

    f_s = jax.random.normal(k1, (B, C, H, Wd), dtype=jnp.float32)
    f_t = jax.random.normal(k2, (B, C, H, Wd), dtype=jnp.float32)
    labels = jax.random.randint(k3, (B,), 0, num_classes, dtype=jnp.int32)
    groups = jax.random.randint(k4, (B,), 0, num_groups, dtype=jnp.int32)

    loss_fn = KLLossPallas(w_m=w_m, num_groups=num_groups, num_classes=num_classes)

    loss = loss_fn(f_s, f_t, groups, labels, False)
    jax.block_until_ready(loss)
    loss_joint = loss_fn(f_s, f_t, groups, labels, True)
    jax.block_until_ready(loss_joint)

    # Sanity check against a NumPy port of the PyTorch reference.  Tolerance is
    # loose on purpose: it covers the approximate EUP reciprocal used in the
    # kernel epilogue while still catching real math/layout bugs.
    ref = _reference_loss(f_s, f_t, groups, labels, w_m, num_groups, num_classes, False)
    ref_joint = _reference_loss(f_s, f_t, groups, labels, w_m, num_groups, num_classes, True)

    def _close(a, b, tol=5e-2):
        return abs(a - b) <= tol * max(1.0, abs(b))

    assert bool(jnp.isfinite(loss)) and bool(jnp.isfinite(loss_joint))
    assert _close(float(loss), float(ref)), (float(loss), float(ref))
    assert _close(float(loss_joint), float(ref_joint)), (float(loss_joint), float(ref_joint))

    print("KERNEL_OK")
</pallas_src>

<mosaic_0001>
module attributes {stable_mosaic.version = 11 : i64} {
  func.func @_kl_matrix_kernel(%arg0: i32, %arg1: i32, %arg2: memref<8x512xf32, #tpu.memory_space<vmem>>, %arg3: memref<8x512xf32, #tpu.memory_space<vmem>>, %arg4: memref<8x8xf32, #tpu.memory_space<vmem>>, %arg5: memref<8x1xf32, #tpu.memory_space<vmem>>, %arg6: memref<8x1xf32, #tpu.memory_space<vmem>>, %arg7: memref<8x1xf32, #tpu.memory_space<vmem>>, %arg8: memref<8x1xf32, #tpu.memory_space<vmem>>, %arg9: memref<8x1xf32, #tpu.memory_space<vmem>>, %arg10: memref<8x1xf32, #tpu.memory_space<vmem>>, %arg11: memref<8x8xf32, #tpu.memory_space<vmem>>) attributes {dimension_semantics = [#tpu.dimension_semantics<parallel>, #tpu.dimension_semantics<arbitrary>], iteration_bounds = array<i64: 1, 2>, scalar_prefetch = 0 : i64, scratch_operands = 6 : i64, tpu.core_type = #tpu.core_type<tc>, window_params = [{transform_indices = @transform_0, window_bounds = array<i64: 8, 512>}, {transform_indices = @transform_1, window_bounds = array<i64: 8, 512>}, {transform_indices = @transform_2, window_bounds = array<i64: 8, 8>}, {transform_indices = @transform_3, window_bounds = array<i64: 8, 1>}]} {
    %c0_i32 = arith.constant 0 : i32
    %0 = arith.cmpi eq, %arg1, %c0_i32 : i32
    %1 = arith.extui %0 : i1 to i32
    %c0_i32_0 = arith.constant 0 : i32
    %2 = arith.cmpi ne, %1, %c0_i32_0 : i32
    scf.if %2 {
      %cst_34 = arith.constant -1.000000e+30 : f32
      %58 = vector.broadcast %cst_34 : f32 to vector<8x1xf32>
      %c0_35 = arith.constant 0 : index
      %c0_36 = arith.constant 0 : index
      %59 = vector.load %arg6[%c0_35, %c0_36] : memref<8x1xf32, #tpu.memory_space<vmem>>, vector<8x1xf32>
      tpu.vector_store %arg6[%c0_35, %c0_36], %58 {strides = array<i32>} : memref<8x1xf32, #tpu.memory_space<vmem>>, vector<8x1xf32>,
      %cst_37 = arith.constant 0.000000e+00 : f32
      %60 = vector.broadcast %cst_37 : f32 to vector<8x1xf32>
      %c0_38 = arith.constant 0 : index
      %c0_39 = arith.constant 0 : index
      %61 = vector.load %arg7[%c0_38, %c0_39] : memref<8x1xf32, #tpu.memory_space<vmem>>, vector<8x1xf32>
      tpu.vector_store %arg7[%c0_38, %c0_39], %60 {strides = array<i32>} : memref<8x1xf32, #tpu.memory_space<vmem>>, vector<8x1xf32>,
      %cst_40 = arith.constant -1.000000e+30 : f32
      %62 = vector.broadcast %cst_40 : f32 to vector<8x1xf32>
      %c0_41 = arith.constant 0 : index
      %c0_42 = arith.constant 0 : index
      %63 = vector.load %arg8[%c0_41, %c0_42] : memref<8x1xf32, #tpu.memory_space<vmem>>, vector<8x1xf32>
      tpu.vector_store %arg8[%c0_41, %c0_42], %62 {strides = array<i32>} : memref<8x1xf32, #tpu.memory_space<vmem>>, vector<8x1xf32>,
      %cst_43 = arith.constant 0.000000e+00 : f32
      %64 = vector.broadcast %cst_43 : f32 to vector<8x1xf32>
      %c0_44 = arith.constant 0 : index
      %c0_45 = arith.constant 0 : index
      %65 = vector.load %arg9[%c0_44, %c0_45] : memref<8x1xf32, #tpu.memory_space<vmem>>, vector<8x1xf32>
      tpu.vector_store %arg9[%c0_44, %c0_45], %64 {strides = array<i32>} : memref<8x1xf32, #tpu.memory_space<vmem>>, vector<8x1xf32>,
      %cst_46 = arith.constant 0.000000e+00 : f32
      %66 = vector.broadcast %cst_46 : f32 to vector<8x1xf32>
      %c0_47 = arith.constant 0 : index
      %c0_48 = arith.constant 0 : index
      %67 = vector.load %arg10[%c0_47, %c0_48] : memref<8x1xf32, #tpu.memory_space<vmem>>, vector<8x1xf32>
      tpu.vector_store %arg10[%c0_47, %c0_48], %66 {strides = array<i32>} : memref<8x1xf32, #tpu.memory_space<vmem>>, vector<8x1xf32>,
      %cst_49 = arith.constant 0.000000e+00 : f32
      %68 = vector.broadcast %cst_49 : f32 to vector<8x8xf32>
      %c0_50 = arith.constant 0 : index
      %c0_51 = arith.constant 0 : index
      %69 = vector.load %arg11[%c0_50, %c0_51] : memref<8x8xf32, #tpu.memory_space<vmem>>, vector<8x8xf32>
      tpu.vector_store %arg11[%c0_50, %c0_51], %68 {strides = array<i32>} : memref<8x8xf32, #tpu.memory_space<vmem>>, vector<8x8xf32>,
    } else {
    }
    %c0 = arith.constant 0 : index
    %c0_1 = arith.constant 0 : index
    %3 = vector.load %arg2[%c0, %c0_1] : memref<8x512xf32, #tpu.memory_space<vmem>>, vector<8x512xf32>
    %c0_2 = arith.constant 0 : index
    %c0_3 = arith.constant 0 : index
    %4 = vector.load %arg3[%c0_2, %c0_3] : memref<8x512xf32, #tpu.memory_space<vmem>>, vector<8x512xf32>
    %c0_4 = arith.constant 0 : index
    %c0_5 = arith.constant 0 : index
    %5 = vector.load %arg6[%c0_4, %c0_5] : memref<8x1xf32, #tpu.memory_space<vmem>>, vector<8x1xf32>
    %cst = arith.constant dense<0xFF800000> : vector<8xf32>
    %6 = vector.multi_reduction <maximumf>, %3, %cst [1] : vector<8x512xf32> to vector<8xf32>
    %7 = vector.shape_cast %6 : vector<8xf32> to vector<8x1xf32>
    %8 = arith.maximumf %5, %7 : vector<8x1xf32>
    %c0_6 = arith.constant 0 : index
    %c0_7 = arith.constant 0 : index
    %9 = vector.load %arg7[%c0_6, %c0_7] : memref<8x1xf32, #tpu.memory_space<vmem>>, vector<8x1xf32>
    %10 = arith.subf %5, %8 : vector<8x1xf32>
    %11 = math.exp %10 : vector<8x1xf32>
    %12 = arith.mulf %9, %11 : vector<8x1xf32>
    %13 = vector.broadcast %8 : vector<8x1xf32> to vector<8x512xf32>
    %14 = arith.subf %3, %13 : vector<8x512xf32>
    %15 = math.exp %14 : vector<8x512xf32>
    %cst_8 = arith.constant dense<0.000000e+00> : vector<8xf32>
    %16 = vector.multi_reduction <add>, %15, %cst_8 [1] : vector<8x512xf32> to vector<8xf32>
    %17 = vector.shape_cast %16 : vector<8xf32> to vector<8x1xf32>
    %18 = arith.addf %12, %17 : vector<8x1xf32>
    %c0_9 = arith.constant 0 : index
    %c0_10 = arith.constant 0 : index
    %19 = vector.load %arg7[%c0_9, %c0_10] : memref<8x1xf32, #tpu.memory_space<vmem>>, vector<8x1xf32>
    tpu.vector_store %arg7[%c0_9, %c0_10], %18 {strides = array<i32>} : memref<8x1xf32, #tpu.memory_space<vmem>>, vector<8x1xf32>,
    %c0_11 = arith.constant 0 : index
    %c0_12 = arith.constant 0 : index
    %20 = vector.load %arg6[%c0_11, %c0_12] : memref<8x1xf32, #tpu.memory_space<vmem>>, vector<8x1xf32>
    tpu.vector_store %arg6[%c0_11, %c0_12], %8 {strides = array<i32>} : memref<8x1xf32, #tpu.memory_space<vmem>>, vector<8x1xf32>,
    %c0_13 = arith.constant 0 : index
    %c0_14 = arith.constant 0 : index
    %21 = vector.load %arg8[%c0_13, %c0_14] : memref<8x1xf32, #tpu.memory_space<vmem>>, vector<8x1xf32>
    %cst_15 = arith.constant dense<0xFF800000> : vector<8xf32>
    %22 = vector.multi_reduction <maximumf>, %4, %cst_15 [1] : vector<8x512xf32> to vector<8xf32>
    %23 = vector.shape_cast %22 : vector<8xf32> to vector<8x1xf32>
    %24 = arith.maximumf %21, %23 : vector<8x1xf32>
    %25 = arith.subf %21, %24 : vector<8x1xf32>
    %26 = math.exp %25 : vector<8x1xf32>
    %27 = vector.broadcast %24 : vector<8x1xf32> to vector<8x512xf32>
    %28 = arith.subf %4, %27 : vector<8x512xf32>
    %29 = math.exp %28 : vector<8x512xf32>
    %c0_16 = arith.constant 0 : index
    %c0_17 = arith.constant 0 : index
    %30 = vector.load %arg9[%c0_16, %c0_17] : memref<8x1xf32, #tpu.memory_space<vmem>>, vector<8x1xf32>
    %c0_18 = arith.constant 0 : index
    %c0_19 = arith.constant 0 : index
    %31 = vector.load %arg10[%c0_18, %c0_19] : memref<8x1xf32, #tpu.memory_space<vmem>>, vector<8x1xf32>
    %32 = arith.subf %21, %24 : vector<8x1xf32>
    %33 = arith.mulf %32, %30 : vector<8x1xf32>
    %34 = arith.addf %31, %33 : vector<8x1xf32>
    %35 = arith.mulf %26, %34 : vector<8x1xf32>
    %36 = vector.broadcast %24 : vector<8x1xf32> to vector<8x512xf32>
    %37 = arith.subf %4, %36 : vector<8x512xf32>
    %38 = arith.mulf %29, %37 : vector<8x512xf32>
    %cst_20 = arith.constant dense<0.000000e+00> : vector<8xf32>
    %39 = vector.multi_reduction <add>, %38, %cst_20 [1] : vector<8x512xf32> to vector<8xf32>
    %40 = vector.shape_cast %39 : vector<8xf32> to vector<8x1xf32>
    %41 = arith.addf %35, %40 : vector<8x1xf32>
    %c0_21 = arith.constant 0 : index
    %c0_22 = arith.constant 0 : index
    %42 = vector.load %arg10[%c0_21, %c0_22] : memref<8x1xf32, #tpu.memory_space<vmem>>, vector<8x1xf32>
    tpu.vector_store %arg10[%c0_21, %c0_22], %41 {strides = array<i32>} : memref<8x1xf32, #tpu.memory_space<vmem>>, vector<8x1xf32>,
    %43 = arith.mulf %26, %30 : vector<8x1xf32>
    %cst_23 = arith.constant dense<0.000000e+00> : vector<8xf32>
    %44 = vector.multi_reduction <add>, %29, %cst_23 [1] : vector<8x512xf32> to vector<8xf32>
    %45 = vector.shape_cast %44 : vector<8xf32> to vector<8x1xf32>
    %46 = arith.addf %43, %45 : vector<8x1xf32>
    %c0_24 = arith.constant 0 : index
    %c0_25 = arith.constant 0 : index
    %47 = vector.load %arg9[%c0_24, %c0_25] : memref<8x1xf32, #tpu.memory_space<vmem>>, vector<8x1xf32>
    tpu.vector_store %arg9[%c0_24, %c0_25], %46 {strides = array<i32>} : memref<8x1xf32, #tpu.memory_space<vmem>>, vector<8x1xf32>,
    %c0_26 = arith.constant 0 : index
    %c0_27 = arith.constant 0 : index
    %48 = vector.load %arg8[%c0_26, %c0_27] : memref<8x1xf32, #tpu.memory_space<vmem>>, vector<8x1xf32>
    tpu.vector_store %arg8[%c0_26, %c0_27], %24 {strides = array<i32>} : memref<8x1xf32, #tpu.memory_space<vmem>>, vector<8x1xf32>,
    %c0_28 = arith.constant 0 : index
    %c0_29 = arith.constant 0 : index
    %49 = vector.load %arg11[%c0_28, %c0_29] : memref<8x8xf32, #tpu.memory_space<vmem>>, vector<8x8xf32>
    %50 = vector.broadcast %26 : vector<8x1xf32> to vector<8x8xf32>
    %51 = arith.mulf %49, %50 : vector<8x8xf32>
    %cst_30 = arith.constant dense<0.000000e+00> : vector<8x8xf32>
    %52 = tpu.matmul %29, %3, %cst_30 {dimension_numbers = #tpu.dot_dimension_numbers<[1], [1], [0], [0], [0, 0, 1, 0], [], []>} : vector<8x512xf32>, vector<8x512xf32>, vector<8x8xf32> -> vector<8x8xf32>
    %53 = arith.addf %51, %52 : vector<8x8xf32>
    %c0_31 = arith.constant 0 : index
    %c0_32 = arith.constant 0 : index
    %54 = vector.load %arg11[%c0_31, %c0_32] : memref<8x8xf32, #tpu.memory_space<vmem>>, vector<8x8xf32>
    tpu.vector_store %arg11[%c0_31, %c0_32], %53 {strides = array<i32>} : memref<8x8xf32, #tpu.memory_space<vmem>>, vector<8x8xf32>,
    %c1_i32 = arith.constant 1 : i32
    %55 = arith.cmpi eq, %arg1, %c1_i32 : i32
    %56 = arith.extui %55 : i1 to i32
    %c0_i32_33 = arith.constant 0 : i32
    %57 = arith.cmpi ne, %56, %c0_i32_33 : i32
    scf.if %57 {
      %c0_34 = arith.constant 0 : index
      %c0_35 = arith.constant 0 : index
      %58 = vector.load %arg9[%c0_34, %c0_35] : memref<8x1xf32, #tpu.memory_space<vmem>>, vector<8x1xf32>
      %59 = tpu.reciprocal %58 {approx = true} : vector<8x1xf32> -> vector<8x1xf32>
      %c0_36 = arith.constant 0 : index
      %c0_37 = arith.constant 0 : index
      %60 = vector.load %arg10[%c0_36, %c0_37] : memref<8x1xf32, #tpu.memory_space<vmem>>, vector<8x1xf32>
      %61 = arith.mulf %60, %59 : vector<8x1xf32>
      %c0_38 = arith.constant 0 : index
      %c0_39 = arith.constant 0 : index
      %62 = vector.load %arg9[%c0_38, %c0_39] : memref<8x1xf32, #tpu.memory_space<vmem>>, vector<8x1xf32>
      %63 = math.log %62 : vector<8x1xf32>
      %64 = arith.subf %61, %63 : vector<8x1xf32>
      %c0_40 = arith.constant 0 : index
      %c0_41 = arith.constant 0 : index
      %65 = vector.load %arg11[%c0_40, %c0_41] : memref<8x8xf32, #tpu.memory_space<vmem>>, vector<8x8xf32>
      %66 = vector.broadcast %59 : vector<8x1xf32> to vector<8x8xf32>
      %67 = arith.mulf %65, %66 : vector<8x8xf32>
      %68 = vector.broadcast %64 : vector<8x1xf32> to vector<8x8xf32>
      %69 = arith.subf %68, %67 : vector<8x8xf32>
      %c0_42 = arith.constant 0 : index
      %c0_43 = arith.constant 0 : index
      %70 = vector.load %arg4[%c0_42, %c0_43] : memref<8x8xf32, #tpu.memory_space<vmem>>, vector<8x8xf32>
      tpu.vector_store %arg4[%c0_42, %c0_43], %69 {strides = array<i32>} : memref<8x8xf32, #tpu.memory_space<vmem>>, vector<8x8xf32>,
      %c0_44 = arith.constant 0 : index
      %c0_45 = arith.constant 0 : index
      %71 = vector.load %arg6[%c0_44, %c0_45] : memref<8x1xf32, #tpu.memory_space<vmem>>, vector<8x1xf32>
      %c0_46 = arith.constant 0 : index
      %c0_47 = arith.constant 0 : index
      %72 = vector.load %arg7[%c0_46, %c0_47] : memref<8x1xf32, #tpu.memory_space<vmem>>, vector<8x1xf32>
      %73 = math.log %72 : vector<8x1xf32>
      %74 = arith.addf %71, %73 : vector<8x1xf32>
      %c0_48 = arith.constant 0 : index
      %c0_49 = arith.constant 0 : index
      %75 = vector.load %arg5[%c0_48, %c0_49] : memref<8x1xf32, #tpu.memory_space<vmem>>, vector<8x1xf32>
      tpu.vector_store %arg5[%c0_48, %c0_49], %74 {strides = array<i32>} : memref<8x1xf32, #tpu.memory_space<vmem>>, vector<8x1xf32>,
    } else {
    }
    return
  }
  func.func @transform_0(%arg0: i32, %arg1: i32) -> (i32, i32) {
    %c0_i32 = arith.constant 0 : i32
    return %arg0, %arg1 : i32, i32
  }
  func.func @transform_1(%arg0: i32, %arg1: i32) -> (i32, i32) {
    %c0_i32 = arith.constant 0 : i32
    %c0_i32_0 = arith.constant 0 : i32
    return %c0_i32, %arg1 : i32, i32
  }
  func.func @transform_2(%arg0: i32, %arg1: i32) -> (i32, i32) {
    %c0_i32 = arith.constant 0 : i32
    %c0_i32_0 = arith.constant 0 : i32
    return %c0_i32, %arg0 : i32, i32
  }
  func.func @transform_3(%arg0: i32, %arg1: i32) -> (i32, i32) {
    %c0_i32 = arith.constant 0 : i32
    %c0_i32_0 = arith.constant 0 : i32
    return %arg0, %c0_i32 : i32, i32
  }
}

</mosaic_0001>

<bundles_post_ra>
// kernel: a_call__.1
= control target key start
LH: loop header
LB: loop body
LE: loop exit
PB: predicated region body
PF: predicated region fallthrough
CT: control target
= control target key end

     0   :  { %s745_s12 = smov 0   ;;  %s747_s13 = smov 0   ;;  %s810_s0 = inlined_call_operand.vmem [shape: f32[8,1024], index: 0, kind: input, shape index: {}]   ;;  %s811_s1 = inlined_call_operand.vmem [shape: f32[8,1024], index: 1, kind: input, shape index: {}]   ;;  %s812_s2 = inlined_call_operand.vmem [shape: f32[8,8], index: 2, kind: output, shape index: {0}]   ;;  %s813_s3 = inlined_call_operand.vmem [shape: f32[8,1], index: 3, kind: output, shape index: {1}]  }
   0x1   :  { %s749_s14 = smov 0  }
   0x2 LB: > { %s23_s15 = sadd.s32 1, %s715_s13  ;;  %p629_p0 = scmp.ge.s32.totalorder %s719_s14, 1  ;;  %s719_s14 = sphi %s749_s14, %s14_s14   ;;  %s715_s13 = sphi %s747_s13, %s815_s13   ;;  %s711_s12 = sphi %s745_s12, %s814_s12  }
   0x3   : > { %p24_p1 = scmp.ge.s32.totalorder %s23_s15, 2  ;;  %p170_p2 = scmp.lt.s32.totalorder %s719_s14, 3 }
   0x5   : > { %s817_s15 = smov (%p24_p1, %s23_s15), 0  ;;  %p171_p3 = pnand %p629_p0, %p170_p2 }
   0x6   : > { %s630_s16 = sshll.u32 (!%p171_p3), %s711_s12, 2  ;;  %p634_p5 = scmp.ne.s32.totalorder (!%p171_p3), %s711_s12, 0 }
   0x7   : > { %174 = sbr.rel (%p171_p3) target bundleno = 628 (0x274), region = 28  ;;  %p209_p4 = scmp.lt.s32.totalorder (!%p171_p3), %s630_s16, 7 }
   0xe   : > { %s819_s16 = smov (!%p209_p4, %s630_s16), 7  ;;  %233 = sbr.rel (%p634_p5) target bundleno = 21 (0x15), region = 32 }
   0xf   : > { %s631_s17 = sshll.u32 %s819_s16, 3  ;;  %vm234_vm0 = vcmask (!%p634_p5), 7168   ;;  %vm240_vm1 = vcmask (!%p634_p5), 64512   ;;  %v721_v0 = vmov (!%p634_p5), -1e+30   ;;  %v722_v1 = vmov (!%p634_p5), 0.0  }
  0x10   : > { %s214_s20 = scalar_lea.vmem %s810_s0, %s631_s17  ;;  %s220_s23 = scalar_lea.vmem %s811_s1, %s631_s17  ;;  %235 = vst.msk [vmem:[#allocation2] sm:$0xff] (!%p634_p5), %vm234_vm0, %v721_v0  ;;  %237 = vst.msk [vmem:[#allocation4] sm:$0xff] (!%p634_p5), %vm234_vm0, %v721_v0 }
  0x11   : > { %236 = vst.msk [vmem:[#allocation3] sm:$0xff] (!%p634_p5), %vm234_vm0, %v722_v1  ;;  %238 = vst.msk [vmem:[#allocation5] sm:$0xff] (!%p634_p5), %vm234_vm0, %v722_v1 }
  0x12   : > { %239 = vst.msk [vmem:[#allocation6] sm:$0xff] (!%p634_p5), %vm234_vm0, %v722_v1 }
  0x13   : > { %241 = vst.msk [vmem:[#allocation7] sm:$0xff] (!%p634_p5), %vm240_vm1, %v722_v1 }
  0x15 PF: > { %v246_v2 = vld [vmem:[%s220_s23] sm:$0xff]  ;;  %v247_v3 = vld [vmem:[%s220_s23 + $0x8] sm:$0xff]  ;;  %v248_v4 = vld [vmem:[%s220_s23 + $0x10] sm:$0xff]  ;;  %v723_v16 = vmov 0   ;;  %vm285_vm2 = vcmask 7168   ;;  %vm488_vm3 = vcmask 64512  }
  0x16   : > { %v249_v5 = vld [vmem:[%s220_s23 + $0x18] sm:$0xff]  ;;  %v289_v6 = vmax.f32 %v246_v2, %v247_v3  ;;  %v242_v7 = vld [vmem:[%s214_s20] sm:$0xff]  ;;  %v243_v8 = vld [vmem:[%s214_s20 + $0x8] sm:$0xff]  ;;  %669 = vset.pattern.permute.xlu1 %v723_v16  ;;  %668 = vset.pattern.permute.xlu0 %v723_v16  ;;  %p635_p6 = scmp.ne.s32.totalorder %s711_s12, 1 }
  0x17   : > { %v290_v9 = vmax.f32 %v248_v4, %v249_v5  ;;  %v244_v10 = vld [vmem:[%s214_s20 + $0x10] sm:$0xff]  ;;  %v245_v11 = vld [vmem:[%s214_s20 + $0x18] sm:$0xff]  ;;  %v251_v12 = vmax.f32 %v242_v7, %v243_v8  ;;  %347 = vmatprep.subr.mxu0 %v243_v8  ;;  %v773_v18 = vld [vmem:[#allocation2] sm:$0xff] }
  0x18   : > { %v252_v13 = vmax.f32 %v244_v10, %v245_v11  ;;  %417 = vmatprep.subr.mxu1 %v245_v11  ;;  %348 = vmatpush1.xpose.msra.mxu0 %v242_v7  ;;  %v288_v17 = vld [vmem:[#allocation4] sm:$0xff] }
  0x19   : > { %v291_v14 = vmax.f32 %v289_v6, %v290_v9  ;;  %418 = vmatpush1.xpose.msra.mxu1 %v244_v10 }
  0x1a   : > { %v253_v15 = vmax.f32 %v251_v12, %v252_v13 }
  0x1b   : > { %292 = vmax.xlane.f32.xlu0 %v291_v14 }
  0x1c   : > { %254 = vmax.xlane.f32.xlu1 %v253_v15 }
  0xa8   : > { %v293_v19 = vpop.xlane.xlu0 %292 }
  0xa9   : > { %v294_v20 = vmax.f32 %v288_v17, %v293_v19  ;;  %v255_v21 = vpop.xlane.xlu1 %254 }
  0xaa   : > { %v776_v22 = vmax.f32 %v773_v18, %v255_v21 }
  0xab   : > { %v778_v23 = vsub.f32 %v288_v17, %v294_v20  ;;  %339 = vst.msk [vmem:[#allocation4] sm:$0xff] %vm285_vm2, %v294_v20  ;;  %300 = vperm.xlu0 %668, %v294_v20  }
  0xac   : > { %v258_v24 = vsub.f32 %v773_v18, %v776_v22  ;;  %287 = vst.msk [vmem:[#allocation2] sm:$0xff] %vm285_vm2, %v776_v22  ;;  %264 = vperm.xlu1 %669, %v776_v22   ;;  %v340_v18 = vld [vmem:[#allocation7] sm:$0xff] }
  0xad   : > { %v296_v0 = vmul.f32 1.442695, %v778_v23 }
 0x12a   : > { %v301_v25 = vpop.permute.xlu0 %300 }
 0x12b   : > { %v303_v26 = vsub.f32 %v246_v2, %v301_v25  ;;  %v304_v27 = vsub.f32 %v247_v3, %v301_v25  ;;  %v305_v28 = vsub.f32 %v248_v4, %v301_v25  ;;  %v306_v29 = vsub.f32 %v249_v5, %v301_v25  ;;  %v265_v30 = vpop.permute.xlu1 %264  ;;  %v315_v3 = vld [vmem:[#allocation5] sm:$0xff]  ;;  %v316_v5 = vld [vmem:[#allocation6] sm:$0xff] }
 0x12c   : > { %v267_v31 = vsub.f32 %v242_v7, %v265_v30  ;;  %v268_v32 = vsub.f32 %v243_v8, %v265_v30  ;;  %v269_v36 = vsub.f32 %v244_v10, %v265_v30  ;;  %v270_v38 = vsub.f32 %v245_v11, %v265_v30  ;;  %v257_v8 = vld [vmem:[#allocation3] sm:$0xff] }
 0x12d   : > { %v307_v33 = vmul.f32 1.442695, %v303_v26  ;;  %v309_v34 = vmul.f32 1.442695, %v304_v27  ;;  %v311_v35 = vmul.f32 1.442695, %v305_v28  ;;  %v317_v4 = vmul.f32 %v315_v3, %v778_v23 }
 0x12e   : > { %v313_v37 = vmul.f32 1.442695, %v306_v29  ;;  %v271_v39 = vmul.f32 1.442695, %v267_v31  ;;  %v273_v40 = vmul.f32 1.442695, %v268_v32 }
 0x12f   : > { %670 = vpow2.f32 %v307_v33  ;;  %v275_v41 = vmul.f32 1.442695, %v269_v36  ;;  %v277_v42 = vmul.f32 1.442695, %v270_v38  ;;  %v259_v2 = vmul.f32 1.442695, %v258_v24 }
 0x130   : > { %672 = vpow2.f32 %v309_v34  ;;  %v318_v6 = vadd.f32 %v317_v4, %v316_v5  ;;  %v515_v38 = vld [vmem:[#allocation2] sm:$0xff] (!%p635_p6) }
 0x131   : > { %674 = vpow2.f32 %v311_v35 }
 0x132   : > { %676 = vpow2.f32 %v313_v37 }
 0x133   : > { %678 = vpow2.f32 %v271_v39 }
 0x134   : > { %680 = vpow2.f32 %v273_v40 }
 0x135   : > { %682 = vpow2.f32 %v275_v41 }
 0x136   : > { %684 = vpow2.f32 %v277_v42 }
 0x137   : > { %686 = vpow2.f32 %v296_v0 }
 0x138   : > { %688 = vpow2.f32 %v259_v2 }
 0x139   : > { %v671_v43 = vpop.eup %670 }
 0x13a   : > { %v673_v44 = vpop.eup %672  ;;  %v320_v45 = vmul.f32 %v671_v43, %v303_v26 }
 0x13b   : > { %v675_v46 = vpop.eup %674  ;;  %411 = vmatprep.mubr.f32.mxu0 %v673_v44  ;;  %v321_v47 = vmul.f32 %v673_v44, %v304_v27  ;;  %v332_v57 = vadd.f32 %v673_v44, %v671_v43 }
 0x13c   : > { %v677_v48 = vpop.eup %676  ;;  %412 = vmatmul.mubr.f32.vlgmr.msra.gmra.mrb[0].mxu0 %v671_v43  ;;  %v322_v50 = vmul.f32 %v675_v46, %v305_v28  ;;  %v724_v28 = vmov (!%p635_p6), 0  }
 0x13d   : > { %v679_v49 = vpop.eup %678  ;;  %481 = vmatprep.mubr.f32.mxu1 %v677_v48  ;;  %v324_v51 = vadd.f32 %v321_v47, %v320_v45  ;;  %v323_v55 = vmul.f32 %v677_v48, %v306_v29  ;;  %v333_v62 = vadd.f32 %v675_v46, %v332_v57  ;;  %690 = vset.pattern.permute.xlu0 (!%p635_p6), %v724_v28 }
 0x13e   : > { %v681_v52 = vpop.eup %680  ;;  %482 = vmatmul.mubr.f32.vlgmr.msra.gmra.mrb[0].mxu1 %v675_v46 }
 0x13f   : > { %v683_v53 = vpop.eup %682  ;;  %v279_v54 = vadd.f32 %v681_v52, %v679_v49  ;;  %v325_v56 = vadd.f32 %v324_v51, %v322_v50  ;;  %v334_v63 = vadd.f32 %v677_v48, %v333_v62 }
 0x140   : > { %v685_v58 = vpop.eup %684 }
 0x141   : > { %v280_v59 = vadd.f32 %v683_v53, %v279_v54  ;;  %v326_v60 = vadd.f32 %v325_v56, %v323_v55  ;;  %v687_v1 = vpop.eup %686 }
 0x142   : > { %v689_v7 = vpop.eup %688  ;;  %v319_v9 = vmul.f32 %v687_v1, %v318_v6  ;;  %v331_v15 = vmul.f32 %v687_v1, %v315_v3 }
 0x143   : > { %v281_v61 = vadd.f32 %v685_v58, %v280_v59  ;;  %327 = vadd.xlane.f32.xlu0 %v326_v60  ;;  %v261_v11 = vmul.f32 %v689_v7, %v257_v8 }
 0x145   : > { %282 = vadd.xlane.f32.xlu1 %v281_v61 }
 0x149   : > { %335 = vadd.xlane.f32.xlu1 %v334_v63 }
 0x15a   : > { %343 = vperm.xlu1 %669, %v687_v1  }
 0x1d0   : > { %v328_v10 = vpop.xlane.xlu0 %327 }
 0x1d1   : > { %v329_v12 = vadd.f32 %v328_v10, %v319_v9 }
 0x1d2   : > { %v283_v13 = vpop.xlane.xlu1 %282 }
 0x1d3   : > { %v284_v14 = vadd.f32 %v283_v13, %v261_v11  ;;  %330 = vst.msk [vmem:[#allocation6] sm:$0xff] %vm285_vm2, %v329_v12 }
 0x1d5   : > { %286 = vst.msk [vmem:[#allocation3] sm:$0xff] %vm285_vm2, %v284_v14 }
 0x1d6   : > { %v336_v16 = vpop.xlane.xlu1 %335 }
 0x1d7   : > { %v337_v17 = vadd.f32 %v336_v16, %v331_v15 }
 0x1d9   : > { %338 = vst.msk [vmem:[#allocation5] sm:$0xff] %vm285_vm2, %v337_v17 }
 0x1da   : > { %v344_v19 = vpop.permute.xlu1 %343  ;;  %v496_v30 = vld [vmem:[#allocation6] sm:$0xff] (!%p635_p6) }
 0x1db   : > { %v346_v23 = vmul.f32 %v344_v19, %v340_v18 }
 0x1dc   : > { %v516_v29 = vld [vmem:[#allocation3] sm:$0xff] (!%p635_p6) }
 0x1e0   : > { %v494_v27 = vld [vmem:[#allocation5] sm:$0xff] (!%p635_p6) }
 0x1e1   : > { %691 = vrcp.f32 (!%p635_p6), %v494_v27 }
 0x1e2   : > { %693 = vlog2.f32 (!%p635_p6), %v494_v27 }
 0x1e3   : > { %695 = vlog2.f32 (!%p635_p6), %v516_v29 }
 0x1eb   : > { %v692_v31 = vpop.eup (!%p635_p6), %691 }
 0x1ec   : > { %v694_v32 = vpop.eup (!%p635_p6), %693  ;;  %504 = vperm.xlu0 (!%p635_p6), %690, %v692_v31   ;;  %v497_v33 = vmul.f32 (!%p635_p6), %v692_v31, %v496_v30 }
 0x1ed   : > { %v499_v34 = vmul.f32 (!%p635_p6), 0.6931472, %v694_v32  ;;  %v696_v35 = vpop.eup (!%p635_p6), %695 }
 0x1ee   : > { %v518_v37 = vmul.f32 (!%p635_p6), 0.6931472, %v696_v35 }
 0x1ef   : > { %v500_v36 = vsub.f32 (!%p635_p6), %v497_v33, %v499_v34 }
 0x1f0   : > { %v519_v39 = vadd.f32 (!%p635_p6), %v518_v37, %v515_v38 }
 0x1f1   : > { %510 = vperm.xlu0 (!%p635_p6), %690, %v500_v36  }
 0x1f2   : > { %520 = vst.msk [vmem:[%s813_s3] sm:$0xff] (!%p635_p6), %vm285_vm2, %v519_v39 }
 0x20f   : > { %v413_v20 = vpop.f32.mrb[0].mxu0 }
 0x210   : > { %v415_v21 = vpop.f32.mrb[1].mxu0  ;;  %493 = sbr.rel (%p635_p6) target bundleno = 628 (0x274), region = 36 }
 0x211   : > { %v483_v22 = vpop.f32.mrb[0].mxu1 }
 0x212   : > { %v484_v24 = vadd.f32 %v483_v22, %v413_v20  ;;  %v485_v25 = vpop.f32.mrb[1].mxu1 }
 0x214   : > { %v487_v26 = vadd.f32 %v484_v24, %v346_v23 }
 0x216   : > { %489 = vst.msk [vmem:[#allocation7] sm:$0xff] %vm488_vm3, %v487_v26 }
 0x21d   : > { %v501_v41 = vld [vmem:[#allocation7] sm:$0xff] }
 0x26b   : > { %v505_v40 = vpop.permute.xlu0 %504 }
 0x26c   : > { %v507_v42 = vmul.f32 %v505_v40, %v501_v41 }
 0x270   : > { %v511_v43 = vpop.permute.xlu0 %510 }
 0x271   : > { %v513_v44 = vsub.f32 %v511_v43, %v507_v42 }
 0x273   : > { %514 = vst.msk [vmem:[%s812_s2] sm:$0xff] %vm488_vm3, %v513_v44 }
 0x274 PF: > { %s14_s14 = sadd.s32 1, %s719_s14   ;;  %s814_s12 = smov %s715_s13 }
 0x275   : > { %p11_p7 = scmp.ge.s32.totalorder %s14_s14, 4   ;;  %s815_s13 = smov %s817_s15 }
 0x277   :  { %13 = sbr.rel (!%p11_p7) target bundleno = 2 (0x2), region = 81 }

</bundles_post_ra>
